<compile_context>
chip_gen: v7x
topology: tpu7x:2x2x1
jax: 0.10.0
libtpu: 0.0.40
codegen_flags: <defaults>
</compile_context>

<pallas_src>
import jax
import jax.numpy as jnp
from jax.experimental import pallas as pl
from jax.experimental.pallas import tpu as pltpu


def _approximator_kernel(x_ref, w1_ref, b1_ref, w2_ref, b2_ref, o_ref):
    # --- Linear 1 + ReLU: bf16 MXU matmul, f32 accumulate ---
    x = x_ref[...].astype(jnp.bfloat16)
    h = jnp.dot(x, w1_ref[...], preferred_element_type=jnp.float32)
    h = jnp.maximum(h + b1_ref[...], 0.0)             # (TB, H) + (1, H) broadcast

    # --- Linear 2 (head): bf16 MXU matmul, f32 accumulate ---
    logits = jnp.dot(h.astype(jnp.bfloat16), w2_ref[...],
                     preferred_element_type=jnp.float32)
    logits = logits + b2_ref[...]                      # (TB, O) + (1, O) broadcast

    # --- log_softmax over dim=1 (kept in f32, numerically stable) ---
    m = jnp.max(logits, axis=1, keepdims=True)
    shifted = logits - m
    lse = jnp.log(jnp.sum(jnp.exp(shifted), axis=1, keepdims=True))
    o_ref[...] = (shifted - lse).astype(o_ref.dtype)


def _pick_tile_b(batch, target=1024):
    """Largest batch tile <= target dividing `batch`, preferring >=2 grid steps."""
    if batch <= target:
        # Split in two when the half-tile still satisfies the sublane rule
        # (multiple of 8) so v7x's two TensorCores both get a grid step.
        if batch >= 16 and batch % 16 == 0:
            return batch // 2
        return batch
    for t in range(target, 7, -8):     # multiple-of-8 divisors, largest first
        if batch % t == 0:
            return t
    return batch                       # degenerate fallback: single full-array tile


def approximator_dnn(x, w1, b1, w2, b2, *, tile_b=None):
    """Fused Linear -> ReLU -> Linear -> log_softmax.

    x : (B, input_size)        float32 or bfloat16
    w1: (input_size, hidden)   (transposed PyTorch weight)
    b1: (1, hidden)            float32
    w2: (hidden, output)       (transposed PyTorch weight)
    b2: (1, output)            float32
    returns (B, output) float32

    tile_b defaults to ~1024 rows per grid step (auto-clamped to the batch).
    """
    B, in_dim = x.shape
    hidden = w1.shape[1]
    out_dim = w2.shape[1]

    if tile_b is None:
        tile_b = _pick_tile_b(B)
    assert B % tile_b == 0, "batch must be divisible by tile_b"

    # Tiny, grid-invariant weights: store bf16 for the MXU; biases stay f32.
    w1 = w1.astype(jnp.bfloat16)
    w2 = w2.astype(jnp.bfloat16)
    b1 = b1.astype(jnp.float32)
    b2 = b2.astype(jnp.float32)

    grid = (B // tile_b,)

    cost = pl.CostEstimate(
        flops=2 * B * (in_dim * hidden + hidden * out_dim),
        transcendentals=B * (out_dim + 1),               # exp per class + log
        bytes_accessed=(x.size * x.dtype.itemsize        # stream x
                        + B * out_dim * 4                # write y
                        + (w1.size + w2.size) * 2        # bf16 weights (once)
                        + (b1.size + b2.size) * 4),      # f32 biases (once)
    )

    return pl.pallas_call(
        _approximator_kernel,
        out_shape=jax.ShapeDtypeStruct((B, out_dim), jnp.float32),
        grid_spec=pltpu.PrefetchScalarGridSpec(
            num_scalar_prefetch=0,
            grid=grid,
            in_specs=[
                pl.BlockSpec((tile_b, in_dim), lambda i: (i, 0)),    # x tile (streamed)
                pl.BlockSpec((in_dim, hidden), lambda i: (0, 0)),    # W1 (resident)
                pl.BlockSpec((1, hidden),      lambda i: (0, 0)),    # b1 (resident)
                pl.BlockSpec((hidden, out_dim), lambda i: (0, 0)),   # W2 (resident)
                pl.BlockSpec((1, out_dim),     lambda i: (0, 0)),    # b2 (resident)
            ],
            out_specs=pl.BlockSpec((tile_b, out_dim), lambda i: (i, 0)),
        ),
        compiler_params=pltpu.CompilerParams(
            dimension_semantics=("parallel",),
            vmem_limit_bytes=32 * 1024 * 1024,
        ),
        cost_estimate=cost,
    )(x, w1, b1, w2, b2)


def init_params(key, input_size, output_size):
    """Deterministic init matching PyTorch Linear's U(-1/sqrt(fan_in), 1/sqrt(fan_in))."""
    hidden = input_size // output_size   # integer division, matching int(in / out)
    k1, k2, k3, k4 = jax.random.split(key, 4)
    bound1 = 1.0 / jnp.sqrt(input_size)
    bound2 = 1.0 / jnp.sqrt(hidden)
    # Stored pre-transposed: (in, out)
    w1 = jax.random.uniform(k1, (input_size, hidden), jnp.float32, -bound1, bound1)
    b1 = jax.random.uniform(k2, (1, hidden), jnp.float32, -bound1, bound1)
    w2 = jax.random.uniform(k3, (hidden, output_size), jnp.float32, -bound2, bound2)
    b2 = jax.random.uniform(k4, (1, output_size), jnp.float32, -bound2, bound2)
    return w1, b1, w2, b2


def reference(x, w1, b1, w2, b2):
    h = jnp.maximum(x @ w1 + b1, 0.0)
    logits = h @ w2 + b2
    return jax.nn.log_softmax(logits, axis=1)


if __name__ == "__main__":
    input_size = 32
    output_size = 4          # hidden = 32 // 4 = 8
    batch = 64               # small test shape; auto tile_b -> 32 (2 parallel grid steps)

    key = jax.random.PRNGKey(0)
    kx, kp = jax.random.split(key)
    x = jax.random.normal(kx, (batch, input_size), jnp.float32)
    w1, b1, w2, b2 = init_params(kp, input_size, output_size)

    out = approximator_dnn(x, w1, b1, w2, b2)
    out = jax.block_until_ready(out)

    ref = reference(x, w1, b1, w2, b2)
    assert out.shape == (batch, output_size)
    # bf16 MXU inputs (f32 accumulate) -> relaxed tolerance vs the pure-f32 reference.
    assert jnp.allclose(out, ref, atol=5e-2, rtol=1e-2), "mismatch vs reference"

    print("KERNEL_OK")
</pallas_src>

<mosaic_0001>
module attributes {stable_mosaic.version = 11 : i64} {
  func.func @_approximator_kernel(%arg0: i32, %arg1: memref<32x32xf32, #tpu.memory_space<vmem>>, %arg2: memref<32x8xbf16, #tpu.memory_space<vmem>>, %arg3: memref<1x8xf32, #tpu.memory_space<vmem>>, %arg4: memref<8x4xbf16, #tpu.memory_space<vmem>>, %arg5: memref<1x4xf32, #tpu.memory_space<vmem>>, %arg6: memref<32x4xf32, #tpu.memory_space<vmem>>) attributes {dimension_semantics = [#tpu.dimension_semantics<parallel>], iteration_bounds = array<i64: 2>, scalar_prefetch = 0 : i64, scratch_operands = 0 : i64, tpu.core_type = #tpu.core_type<tc>, window_params = [{transform_indices = @transform_0, window_bounds = array<i64: 32, 32>}, {pipeline_mode = #tpu.pipeline_mode<synchronous>, transform_indices = @transform_1, window_bounds = array<i64: 32, 8>}, {pipeline_mode = #tpu.pipeline_mode<synchronous>, transform_indices = @transform_2, window_bounds = array<i64: 1, 8>}, {pipeline_mode = #tpu.pipeline_mode<synchronous>, transform_indices = @transform_3, window_bounds = array<i64: 8, 4>}, {pipeline_mode = #tpu.pipeline_mode<synchronous>, transform_indices = @transform_4, window_bounds = array<i64: 1, 4>}, {transform_indices = @transform_5, window_bounds = array<i64: 32, 4>}]} {
    %c0 = arith.constant 0 : index
    %c0_0 = arith.constant 0 : index
    %0 = vector.load %arg1[%c0, %c0_0] : memref<32x32xf32, #tpu.memory_space<vmem>>, vector<32x32xf32>
    %1 = arith.truncf %0 : vector<32x32xf32> to vector<32x32xbf16>
    %c0_1 = arith.constant 0 : index
    %c0_2 = arith.constant 0 : index
    %2 = vector.load %arg2[%c0_1, %c0_2] : memref<32x8xbf16, #tpu.memory_space<vmem>>, vector<32x8xbf16>
    %cst = arith.constant dense<0.000000e+00> : vector<32x8xf32>
    %3 = tpu.matmul %1, %2, %cst {dimension_numbers = #tpu.dot_dimension_numbers<[1], [0], [0], [1], [0, 0, 1, 1], [], []>} : vector<32x32xbf16>, vector<32x8xbf16>, vector<32x8xf32> -> vector<32x8xf32>
    %c0_3 = arith.constant 0 : index
    %c0_4 = arith.constant 0 : index
    %4 = vector.load %arg3[%c0_3, %c0_4] : memref<1x8xf32, #tpu.memory_space<vmem>>, vector<1x8xf32>
    %5 = vector.broadcast %4 : vector<1x8xf32> to vector<32x8xf32>
    %6 = arith.addf %3, %5 : vector<32x8xf32>
    %cst_5 = arith.constant 0.000000e+00 : f32
    %7 = vector.broadcast %cst_5 : f32 to vector<32x8xf32>
    %8 = arith.maximumf %6, %7 : vector<32x8xf32>
    %9 = arith.truncf %8 : vector<32x8xf32> to vector<32x8xbf16>
    %c0_6 = arith.constant 0 : index
    %c0_7 = arith.constant 0 : index
    %10 = vector.load %arg4[%c0_6, %c0_7] : memref<8x4xbf16, #tpu.memory_space<vmem>>, vector<8x4xbf16>
    %cst_8 = arith.constant dense<0.000000e+00> : vector<32x4xf32>
    %11 = tpu.matmul %9, %10, %cst_8 {dimension_numbers = #tpu.dot_dimension_numbers<[1], [0], [0], [1], [0, 0, 1, 1], [], []>} : vector<32x8xbf16>, vector<8x4xbf16>, vector<32x4xf32> -> vector<32x4xf32>
    %c0_9 = arith.constant 0 : index
    %c0_10 = arith.constant 0 : index
    %12 = vector.load %arg5[%c0_9, %c0_10] : memref<1x4xf32, #tpu.memory_space<vmem>>, vector<1x4xf32>
    %13 = vector.broadcast %12 : vector<1x4xf32> to vector<32x4xf32>
    %14 = arith.addf %11, %13 : vector<32x4xf32>
    %cst_11 = arith.constant dense<0xFF800000> : vector<32xf32>
    %15 = vector.multi_reduction <maximumf>, %14, %cst_11 [1] : vector<32x4xf32> to vector<32xf32>
    %16 = vector.shape_cast %15 : vector<32xf32> to vector<32x1xf32>
    %17 = vector.broadcast %16 : vector<32x1xf32> to vector<32x4xf32>
    %18 = arith.subf %14, %17 : vector<32x4xf32>
    %19 = math.exp %18 : vector<32x4xf32>
    %cst_12 = arith.constant dense<0.000000e+00> : vector<32xf32>
    %20 = vector.multi_reduction <add>, %19, %cst_12 [1] : vector<32x4xf32> to vector<32xf32>
    %21 = vector.shape_cast %20 : vector<32xf32> to vector<32x1xf32>
    %22 = math.log %21 : vector<32x1xf32>
    %23 = vector.broadcast %22 : vector<32x1xf32> to vector<32x4xf32>
    %24 = arith.subf %18, %23 : vector<32x4xf32>
    %c0_13 = arith.constant 0 : index
    %c0_14 = arith.constant 0 : index
    %25 = vector.load %arg6[%c0_13, %c0_14] : memref<32x4xf32, #tpu.memory_space<vmem>>, vector<32x4xf32>
    tpu.vector_store %arg6[%c0_13, %c0_14], %24 {strides = array<i32>} : memref<32x4xf32, #tpu.memory_space<vmem>>, vector<32x4xf32>,
    return
  }
  func.func @transform_0(%arg0: i32) -> (i32, i32) {
    %c0_i32 = arith.constant 0 : i32
    %c0_i32_0 = arith.constant 0 : i32
    return %arg0, %c0_i32 : i32, i32
  }
  func.func @transform_1(%arg0: i32) -> (i32, i32) {
    %c0_i32 = arith.constant 0 : i32
    %c0_i32_0 = arith.constant 0 : i32
    %c0_i32_1 = arith.constant 0 : i32
    return %c0_i32, %c0_i32_0 : i32, i32
  }
  func.func @transform_2(%arg0: i32) -> (i32, i32) {
    %c0_i32 = arith.constant 0 : i32
    %c0_i32_0 = arith.constant 0 : i32
    %c0_i32_1 = arith.constant 0 : i32
    return %c0_i32, %c0_i32_0 : i32, i32
  }
  func.func @transform_3(%arg0: i32) -> (i32, i32) {
    %c0_i32 = arith.constant 0 : i32
    %c0_i32_0 = arith.constant 0 : i32
    %c0_i32_1 = arith.constant 0 : i32
    return %c0_i32, %c0_i32_0 : i32, i32
  }
  func.func @transform_4(%arg0: i32) -> (i32, i32) {
    %c0_i32 = arith.constant 0 : i32
    %c0_i32_0 = arith.constant 0 : i32
    %c0_i32_1 = arith.constant 0 : i32
    return %c0_i32, %c0_i32_0 : i32, i32
  }
  func.func @transform_5(%arg0: i32) -> (i32, i32) {
    %c0_i32 = arith.constant 0 : i32
    %c0_i32_0 = arith.constant 0 : i32
    return %arg0, %c0_i32 : i32, i32
  }
}

</mosaic_0001>

<bundles_post_ra>
// kernel: tpu_custom_call.1
= control target key start
LH: loop header
LB: loop body
LE: loop exit
PB: predicated region body
PF: predicated region fallthrough
CT: control target
= control target key end

     0   :  { %s602_s18 = smov 0   ;;  %s653_s0 = inlined_call_operand.vmem [shape: f32[64,32], index: 0, kind: input, shape index: {}]   ;;  %s654_s1 = inlined_call_operand.vmem [shape: bf16[32,8], index: 1, kind: input, shape index: {}]   ;;  %s655_s2 = inlined_call_operand.vmem [shape: f32[1,8], index: 2, kind: input, shape index: {}]   ;;  %s656_s3 = inlined_call_operand.vmem [shape: bf16[8,4], index: 3, kind: input, shape index: {}]   ;;  %s657_s4 = inlined_call_operand.vmem [shape: f32[1,4], index: 4, kind: input, shape index: {}]   ;;  %s658_s5 = inlined_call_operand.vmem [shape: f32[64,4], index: 5, kind: output, shape index: {}]  }
   0x1 LB: > { %s497_s19 = sadd.s32 4294967295, %s570_s18   ;;  %p501_p0 = scmp.ge.s32.totalorder %s570_s18, 1  ;;  %s570_s18 = sphi %s602_s18, %s15_s18  }
   0x2   : > { %p188_p1 = scmp.lt.s32.totalorder %s570_s18, 3 }
   0x4   : > { %p189_p2 = pnand %p501_p0, %p188_p1 }
   0x5   : > { %v546_v0 = vld [vmem:[%s654_s1] sm:$0xff] (!%p189_p2)   ;;  %s502_s22 = sshll.u32 (!%p189_p2), %s497_s19, 2  ;;  %v547_v1 = vld [vmem:[%s654_s1 + $0x8] sm:$0xff] (!%p189_p2)   ;;  %vm258_vm0 = vcmask (!%p189_p2), 261120   ;;  %vm335_vm1 = vcmask (!%p189_p2), 1043456   ;;  %vm328_vm2 = vcmask (!%p189_p2), 64512  }
   0x6   : > { %192 = sbr.rel (%p189_p2) target bundleno = 782 (0x30e), region = 40  ;;  %p217_p3 = scmp.lt.s32.totalorder (!%p189_p2), %s502_s22, 7  ;;  %523 = vmatprep.subr.bf16.mxu0 (!%p189_p2), %v546_v0  ;;  %v320_v8 = vld [vmem:[%s656_s3] sm:$0xf] (!%p189_p2)  ;;  %vm388_vm3 = vcmask (!%p189_p2), 31744  }
   0x7   : > { %524 = vmatpush3.bf16.msra.mxu0 (!%p189_p2), %v546_v0  ;;  %537 = vmatprep.subr.msk.bf16.mxu1 (!%p189_p2), %vm335_vm1, %v320_v8  ;;  %v337_v9 = vsel (!%p189_p2), %vm335_vm1, %v320_v8, 0  ;;  %v506_v10 = vld [vmem:[%s655_s2] ss:$0 sm:$0xff] (!%p189_p2) }
   0x8   : > { %525 = vmatprep.subr.bf16.mxu0 (!%p189_p2), %v547_v1  ;;  %532 = vmatpush3.bf16.msra.mxu1 (!%p189_p2), %v337_v9  ;;  %v511_v25 = vld [vmem:[%s657_s4] ss:$0 sm:$0xff] (!%p189_p2) }
   0xb   : > { %526 = vmatpush3.bf16.msra.mxu0 (!%p189_p2), %v547_v1 }
   0xd   : > { %s660_s22 = smov (!%p217_p3, %s502_s22), 7 }
   0xe   : > { %s503_s25 = sshll.u32 %s660_s22, 3 }
   0xf   : > { %s220_s28 = scalar_lea.vmem %s653_s0, %s503_s25  ;;  %s226_s12 = scalar_lea.vmem %s658_s5, %s503_s25 }
  0x10   : > { %v229_v2 = vld [vmem:[%s220_s28] sm:$0xff]  ;;  %v230_v3 = vld [vmem:[%s220_s28 + $0x8] sm:$0xff]  ;;  %v231_v4 = vld [vmem:[%s220_s28 + $0x10] sm:$0xff] }
  0x11   : > { %v233_v5 = vpack.c.bf16 %v230_v3, %v229_v2  ;;  %v232_v6 = vld [vmem:[%s220_s28 + $0x18] sm:$0xff] }
  0x12   : > { %v234_v7 = vpack.c.bf16 %v232_v6, %v231_v4 }
  0x13   : > { %527 = vmatprep.mubr.msk.bf16.mxu0 %vm258_vm0, %v233_v5 }
  0x14   : > { %528 = vmatmul.mubr.msk.bf16.vlgmr.msra.gmra.mrb[0].mxu0 %vm258_vm0, %v234_v7 }
  0xe7   : > { %v529_v11 = vpop.f32.mrb[0].mxu0 }
  0xe8   : > { %v308_v12 = vadd.f32 %v529_v11, %v506_v10  ;;  %v299_v13 = vpop.f32.mrb[1].mxu0 }
  0xe9   : > { %v300_v14 = vadd.f32 %v506_v10, %v299_v13  ;;  %v530_v15 = vpop.f32.mrb[2].mxu0 }
  0xea   : > { %v311_v16 = vadd.f32 %v530_v15, %v506_v10  ;;  %v302_v17 = vpop.f32.mrb[3].mxu0  ;;  %v316_v19 = vmax.f32 %v308_v12, 0.0 }
  0xeb   : > { %v303_v18 = vadd.f32 %v506_v10, %v302_v17  ;;  %v314_v21 = vmax.f32 %v300_v14, 0.0 }
  0xec   : > { %v317_v20 = vmax.f32 %v311_v16, 0.0 }
  0xed   : > { %v315_v22 = vmax.f32 %v303_v18, 0.0 }
  0xee   : > { %v319_v23 = vpack.c.bf16 %v317_v20, %v316_v19 }
  0xef   : > { %v318_v24 = vpack.c.bf16 %v315_v22, %v314_v21 }
  0xf1   : > { %533 = vmatprep.mubr.msk.bf16.mxu1 %vm328_vm2, %v318_v24 }
  0xf2   : > { %534 = vmatmul.mubr.msk.bf16.vlgmr.msra.gmra.mrb[0].mxu1 %vm328_vm2, %v319_v23 }
 0x1c5   : > { %v535_v26 = vpop.f32.mrb[0].mxu1 }
 0x1c6   : > { %v382_v27 = vadd.f32 %v535_v26, %v511_v25  ;;  %v373_v28 = vpop.f32.mrb[1].mxu1 }
 0x1c7   : > { %v374_v29 = vadd.f32 %v511_v25, %v373_v28  ;;  %v536_v30 = vpop.f32.mrb[2].mxu1 }
 0x1c8   : > { %v385_v31 = vadd.f32 %v536_v30, %v511_v25  ;;  %v376_v32 = vpop.f32.mrb[3].mxu1  ;;  %v395_v33 = vsel %vm388_vm3, %v382_v27, -inf }
 0x1c9   : > { %v377_v34 = vadd.f32 %v511_v25, %v376_v32  ;;  %396 = vmax.xlane.f32.xlu1 %v395_v33  ;;  %v389_v35 = vsel %vm388_vm3, %v374_v29, -inf }
 0x1ca   : > { %390 = vmax.xlane.f32.xlu0 %v389_v35  ;;  %v398_v36 = vsel %vm388_vm3, %v385_v31, -inf }
 0x1cb   : > { %v392_v37 = vsel %vm388_vm3, %v377_v34, -inf }
 0x1cd   : > { %399 = vmax.xlane.f32.xlu1 %v398_v36 }
 0x1ce   : > { %393 = vmax.xlane.f32.xlu0 %v392_v37 }
 0x256   : > { %v397_v38 = vpop.xlane.xlu1 %396 }
 0x257   : > { %v403_v39 = vsub.f32 %v382_v27, %v397_v38  ;;  %v391_v40 = vpop.xlane.xlu0 %390 }
 0x258   : > { %v401_v41 = vsub.f32 %v374_v29, %v391_v40 }
 0x259   : > { %v409_v42 = vmul.f32 1.442695, %v403_v39 }
 0x25a   : > { %v405_v43 = vmul.f32 1.442695, %v401_v41  ;;  %v400_v44 = vpop.xlane.xlu1 %399 }
 0x25b   : > { %v404_v45 = vsub.f32 %v385_v31, %v400_v44  ;;  %v394_v46 = vpop.xlane.xlu0 %393 }
 0x25c   : > { %548 = vpow2.f32 %v405_v43  ;;  %v402_v47 = vsub.f32 %v377_v34, %v394_v46 }
 0x25d   : > { %550 = vpow2.f32 %v409_v42  ;;  %v411_v48 = vmul.f32 1.442695, %v404_v45 }
 0x25e   : > { %v407_v49 = vmul.f32 1.442695, %v402_v47 }
 0x260   : > { %552 = vpow2.f32 %v407_v49 }
 0x261   : > { %554 = vpow2.f32 %v411_v48 }
 0x266   : > { %v549_v50 = vpop.eup %548 }
 0x267   : > { %v413_v51 = vsel %vm388_vm3, %v549_v50, 0.0  ;;  %v551_v52 = vpop.eup %550 }
 0x268   : > { %414 = vadd.xlane.f32.xlu0 %v413_v51  ;;  %v419_v54 = vsel %vm388_vm3, %v551_v52, 0.0 }
 0x26a   : > { %v553_v53 = vpop.eup %552 }
 0x26b   : > { %v416_v55 = vsel %vm388_vm3, %v553_v53, 0.0  ;;  %v555_v56 = vpop.eup %554 }
 0x26c   : > { %420 = vadd.xlane.f32.xlu0 %v419_v54  ;;  %417 = vadd.xlane.f32.xlu1 %v416_v55  ;;  %v422_v57 = vsel %vm388_vm3, %v555_v56, 0.0 }
 0x270   : > { %423 = vadd.xlane.f32.xlu1 %v422_v57 }
 0x2f5   : > { %v415_v58 = vpop.xlane.xlu0 %414 }
 0x2f6   : > { %556 = vlog2.f32 %v415_v58 }
 0x2f9   : > { %v418_v59 = vpop.xlane.xlu1 %417  ;;  %v421_v60 = vpop.xlane.xlu0 %420 }
 0x2fa   : > { %558 = vlog2.f32 %v418_v59 }
 0x2fb   : > { %560 = vlog2.f32 %v421_v60 }
 0x2fd   : > { %v424_v61 = vpop.xlane.xlu1 %423 }
 0x2fe   : > { %562 = vlog2.f32 %v424_v61 }
 0x300   : > { %v557_v62 = vpop.eup %556 }
 0x301   : > { %v426_v63 = vmul.f32 0.6931472, %v557_v62 }
 0x303   : > { %v433_v0 = vsub.f32 %v401_v41, %v426_v63 }
 0x304   : > { %v559_v1 = vpop.eup %558 }
 0x305   : > { %v561_v2 = vpop.eup %560  ;;  %437 = vst.msk [vmem:[%s226_s12] sm:$0xff] %vm388_vm3, %v433_v0  ;;  %v428_v3 = vmul.f32 0.6931472, %v559_v1 }
 0x306   : > { %v430_v4 = vmul.f32 0.6931472, %v561_v2 }
 0x307   : > { %v434_v5 = vsub.f32 %v402_v47, %v428_v3 }
 0x308   : > { %v563_v6 = vpop.eup %562  ;;  %v435_v7 = vsub.f32 %v403_v39, %v430_v4 }
 0x309   : > { %438 = vst.msk [vmem:[%s226_s12 + $0x8] sm:$0xff] %vm388_vm3, %v434_v5  ;;  %v432_v8 = vmul.f32 0.6931472, %v563_v6 }
 0x30a   : > { %439 = vst.msk [vmem:[%s226_s12 + $0x10] sm:$0xff] %vm388_vm3, %v435_v7 }
 0x30b   : > { %v436_v9 = vsub.f32 %v404_v45, %v432_v8 }
 0x30d   : > { %440 = vst.msk [vmem:[%s226_s12 + $0x18] sm:$0xff] %vm388_vm3, %v436_v9 }
 0x30e PF: > { %s15_s18 = sadd.s32 1, %s570_s18  }
 0x30f   : > { %p12_p4 = scmp.ge.s32.totalorder %s15_s18, 4  }
 0x311   :  { %14 = sbr.rel (!%p12_p4) target bundleno = 1 (0x1), region = 70 }

</bundles_post_ra>
